<compile_context>
chip_gen: v5e
topology: v5e:2x2
jax: 0.10.0
libtpu: 0.0.40
codegen_flags: <defaults>
</compile_context>

<pallas_src>
import functools

import numpy as np

import jax
import jax.numpy as jnp
from jax.experimental import pallas as pl
from jax.experimental.pallas import tpu as pltpu

EPS = 1e-5


# --------------------------------------------------------------------------
# Fused kernel
# --------------------------------------------------------------------------
def _resblock_kernel(x_ref, wb1_ref, g1_ref, be1_ref, wb2_ref, g2_ref, be2_ref,
                     *rest, H, W, Cout, has_adjust):
    if has_adjust:
        wadj_ref, badj_ref, out_ref = rest
    else:
        (out_ref,) = rest

    NH = x_ref.shape[0]          # N * H rows
    WCo = W * Cout               # lane-dense width (== 128 in the demo)
    inv_m = 1.0 / float(NH * W)  # 1 / (N*H*W) elements per channel

    # Row index within each image (for masking vertical taps that would cross
    # an image boundary after the roll).
    row = jax.lax.broadcasted_iota(jnp.int32, (NH, 1), 0) % H

    # Channel-group projector: P[i, j] = 1 if lane i and lane j hold the same
    # channel (lane index = w*Cout + c).  dot(v, P) sums each channel group and
    # broadcasts the result back to every lane of that channel.
    ii = jax.lax.broadcasted_iota(jnp.int32, (WCo, WCo), 0)
    jj = jax.lax.broadcasted_iota(jnp.int32, (WCo, WCo), 1)
    P = (ii % Cout == jj % Cout).astype(jnp.float32)

    def conv3x3(z, wb_ref):
        # z: (NH, W*Ci) lane-dense rows; wb_ref: (3, W*Ci, W*Co) banded weights.
        # One MXU matmul per vertical tap; horizontal taps + W zero-padding are
        # folded into the band matrix.
        acc = jnp.dot(z, wb_ref[1], preferred_element_type=jnp.float32)  # kh=1
        up = pltpu.roll(z, shift=1, axis=0)            # up[r] = z[r-1]
        up = jnp.where(row >= 1, up, 0.0)              # zero above first row
        acc = acc + jnp.dot(up, wb_ref[0], preferred_element_type=jnp.float32)
        dn = pltpu.roll(z, shift=NH - 1, axis=0)       # dn[r] = z[r+1]
        dn = jnp.where(row <= H - 2, dn, 0.0)          # zero below last row
        acc = acc + jnp.dot(dn, wb_ref[2], preferred_element_type=jnp.float32)
        return acc

    def batchnorm(acc, g_ref, be_ref):
        # Single-pass batch stats: per-channel sums via the projector P, then a
        # sublane reduce.  E[x^2] - E[x]^2 matches PyTorch's biased batch var.
        grp = jnp.dot(acc, P, preferred_element_type=jnp.float32)
        grp2 = jnp.dot(acc * acc, P, preferred_element_type=jnp.float32)
        mean = jnp.sum(grp, axis=0, keepdims=True) * inv_m     # (1, W*Co)
        ex2 = jnp.sum(grp2, axis=0, keepdims=True) * inv_m     # (1, W*Co)
        var = ex2 - mean * mean
        scale = g_ref[...] * jax.lax.rsqrt(var + EPS)          # (1, W*Co)
        shift = be_ref[...] - mean * scale
        return acc * scale + shift

    x = x_ref[...]                                             # (NH, W*Cin)

    # conv1 -> bn1 -> relu   (conv bias omitted: cancelled by batch-stat BN)
    h1 = jnp.maximum(batchnorm(conv3x3(x, wb1_ref), g1_ref, be1_ref), 0.0)
    # conv2 -> bn2
    h2 = batchnorm(conv3x3(h1, wb2_ref), g2_ref, be2_ref)

    # residual path: 1x1 channel adjust only when Cin != Cout
    if has_adjust:
        res = jnp.dot(x, wadj_ref[...],
                      preferred_element_type=jnp.float32) + badj_ref[...]
    else:
        res = x

    out_ref[...] = jnp.maximum(h2 + res, 0.0)


# --------------------------------------------------------------------------
# Host-side parameter packing (one-time layout prep, plain numpy)
# --------------------------------------------------------------------------
def _band_matrices(w_hwio, W):
    """(3,3,Ci,Co) HWIO conv weight -> (3, W*Ci, W*Co) banded matrices."""
    w = np.asarray(w_hwio, np.float32)
    Ci, Co = w.shape[2], w.shape[3]
    wb = np.zeros((3, W * Ci, W * Co), np.float32)
    for kh in range(3):
        for kw in range(3):
            dw = kw - 1                       # w_in = w_out + dw
            for wo in range(W):
                wi = wo + dw
                if 0 <= wi < W:
                    wb[kh, wi * Ci:(wi + 1) * Ci, wo * Co:(wo + 1) * Co] = w[kh, kw]
    return jnp.asarray(wb)


def pack_params(params, W):
    """Build kernel-ready (lane-dense) parameter layouts."""
    Co = params["g1"].shape[0]

    def tile_lane(v):  # (Co,) -> (1, W*Co), lane index w*Co + c -> v[c]
        return jnp.asarray(np.tile(np.asarray(v, np.float32), W)[None, :])

    packed = {
        "cout": Co,
        "wb1": _band_matrices(params["w1_hwio"], W),
        "wb2": _band_matrices(params["w2_hwio"], W),
        # conv biases b1/b2 intentionally NOT packed: they are no-ops under
        # batch-statistics BatchNorm.
        "g1w": tile_lane(params["g1"]), "be1w": tile_lane(params["be1"]),
        "g2w": tile_lane(params["g2"]), "be2w": tile_lane(params["be2"]),
    }
    if params["wadj"] is not None:
        wadj = np.asarray(params["wadj"], np.float32)           # (Cin, Cout)
        packed["wadj_bd"] = jnp.asarray(
            np.kron(np.eye(W, dtype=np.float32), wadj))         # (W*Cin, W*Cout)
        packed["badjw"] = tile_lane(params["badj"])
    else:
        packed["wadj_bd"] = None
        packed["badjw"] = None
    return packed


# --------------------------------------------------------------------------
# Forward wrapper (public NCHW interface, like the PyTorch module)
# --------------------------------------------------------------------------
def resblock_forward(x_nchw, packed, upsample=None):
    N, Cin, H, W = x_nchw.shape
    Cout = packed["cout"]
    has_adjust = packed["wadj_bd"] is not None

    # NCHW -> lane-dense (N*H, W*Cin) rows (layout glue outside the kernel).
    x2d = jnp.transpose(x_nchw, (0, 2, 3, 1)).astype(jnp.float32)
    x2d = x2d.reshape(N * H, W * Cin)

    kernel = functools.partial(_resblock_kernel, H=H, W=W, Cout=Cout,
                               has_adjust=has_adjust)
    ins = [x2d, packed["wb1"], packed["g1w"], packed["be1w"],
           packed["wb2"], packed["g2w"], packed["be2w"]]
    if has_adjust:
        ins += [packed["wadj_bd"], packed["badjw"]]

    vmem = pl.BlockSpec(memory_space=pltpu.MemorySpace.VMEM)
    out2d = pl.pallas_call(
        kernel,
        out_shape=jax.ShapeDtypeStruct((N * H, W * Cout), jnp.float32),
        in_specs=[vmem] * len(ins),
        out_specs=vmem,
    )(*ins)

    out = out2d.reshape(N, H, W, Cout)
    if upsample is not None:
        # TODO(synk): nearest-neighbour upsample is pure replication with no
        # clean Pallas equivalent; since it commutes with the pointwise tail
        # (relu(up(h)+up(r)) == up(relu(h+r))), it runs once here as jnp glue.
        s = int(upsample)
        out = jnp.repeat(jnp.repeat(out, s, axis=1), s, axis=2)
    return jnp.transpose(out, (0, 3, 1, 2))                     # -> NCHW


# --------------------------------------------------------------------------
# Synthetic parameters + pure-JAX reference (PyTorch training-mode semantics)
# --------------------------------------------------------------------------
def init_params(key, in_channels, out_channels):
    k1, k2, k3, k4, k5, k6 = jax.random.split(key, 6)
    # PyTorch layouts: conv weight (Cout, Cin, kh, kw), bias (Cout,)
    w1_t = 0.1 * jax.random.normal(k1, (out_channels, in_channels, 3, 3), jnp.float32)
    w2_t = 0.1 * jax.random.normal(k2, (out_channels, out_channels, 3, 3), jnp.float32)
    b1 = 0.1 * jax.random.normal(k3, (out_channels,), jnp.float32)
    b2 = 0.1 * jax.random.normal(k4, (out_channels,), jnp.float32)
    if in_channels != out_channels:
        wadj_t = 0.1 * jax.random.normal(k5, (out_channels, in_channels, 1, 1), jnp.float32)
        wadj = jnp.transpose(wadj_t[:, :, 0, 0], (1, 0))        # (Cin, Cout)
        badj = 0.1 * jax.random.normal(k6, (out_channels,), jnp.float32)
    else:  # adjust_channels is None -> identity residual
        wadj = None
        badj = None
    return {
        "w1_hwio": jnp.transpose(w1_t, (2, 3, 1, 0)),           # (3,3,Cin,Cout)
        "w2_hwio": jnp.transpose(w2_t, (2, 3, 1, 0)),           # (3,3,Cout,Cout)
        "b1": b1, "b2": b2,
        "g1": jnp.ones((out_channels,), jnp.float32),
        "be1": jnp.zeros((out_channels,), jnp.float32),
        "g2": jnp.ones((out_channels,), jnp.float32),
        "be2": jnp.zeros((out_channels,), jnp.float32),
        "wadj": wadj, "badj": badj,
    }


def ref_resblock(x_nchw, params, upsample=None):
    """Pure-JAX reference replicating PyTorch ResBlock.forward (training-mode BN)."""
    x = jnp.transpose(x_nchw, (0, 2, 3, 1)).astype(jnp.float32)

    def conv3x3(z, w_hwio, b):
        y = jax.lax.conv_general_dilated(
            z, w_hwio, window_strides=(1, 1), padding="SAME",
            dimension_numbers=("NHWC", "HWIO", "NHWC"))
        return y + b.reshape(1, 1, 1, -1)

    def bn(z, g, be):
        mu = jnp.mean(z, axis=(0, 1, 2), keepdims=True)
        var = jnp.mean((z - mu) ** 2, axis=(0, 1, 2), keepdims=True)
        return ((z - mu) * jax.lax.rsqrt(var + EPS)
                * g.reshape(1, 1, 1, -1) + be.reshape(1, 1, 1, -1))

    h = jax.nn.relu(bn(conv3x3(x, params["w1_hwio"], params["b1"]),
                       params["g1"], params["be1"]))
    h = bn(conv3x3(h, params["w2_hwio"], params["b2"]),
           params["g2"], params["be2"])
    res = x
    if upsample is not None:
        s = int(upsample)
        h = jnp.repeat(jnp.repeat(h, s, axis=1), s, axis=2)
        res = jnp.repeat(jnp.repeat(res, s, axis=1), s, axis=2)
    if params["wadj"] is not None:
        res = (jnp.einsum("nhwc,co->nhwo", res, params["wadj"])
               + params["badj"].reshape(1, 1, 1, -1))
    out = jax.nn.relu(h + res)
    return jnp.transpose(out, (0, 3, 1, 2))


if __name__ == "__main__":
    key = jax.random.PRNGKey(0)
    kx, kp = jax.random.split(key)
    N, Cin, Cout, H, W = 2, 4, 8, 16, 16
    upsample = 2

    x = jax.random.normal(kx, (N, Cin, H, W), jnp.float32)     # NCHW, PyTorch-style
    params = init_params(kp, Cin, Cout)
    packed = pack_params(params, W)

    out = resblock_forward(x, packed, upsample=upsample)
    out = jax.block_until_ready(out)

    ref = ref_resblock(x, params, upsample=upsample)
    assert out.shape == (N, Cout, H * upsample, W * upsample), out.shape
    max_err = float(jnp.max(jnp.abs(out - ref)))
    assert jnp.allclose(out, ref, atol=1e-3, rtol=1e-3), f"max abs err {max_err}"
    print("KERNEL_OK")
</pallas_src>

<mosaic_0001>
module attributes {stable_mosaic.version = 11 : i64} {
  func.func @_resblock_kernel(%arg0: memref<32x64xf32, #tpu.memory_space<vmem>>, %arg1: memref<3x64x128xf32, #tpu.memory_space<vmem>>, %arg2: memref<1x128xf32, #tpu.memory_space<vmem>>, %arg3: memref<1x128xf32, #tpu.memory_space<vmem>>, %arg4: memref<3x128x128xf32, #tpu.memory_space<vmem>>, %arg5: memref<1x128xf32, #tpu.memory_space<vmem>>, %arg6: memref<1x128xf32, #tpu.memory_space<vmem>>, %arg7: memref<64x128xf32, #tpu.memory_space<vmem>>, %arg8: memref<1x128xf32, #tpu.memory_space<vmem>>, %arg9: memref<32x128xf32, #tpu.memory_space<vmem>>) attributes {dimension_semantics = [], scalar_prefetch = 0 : i64, scratch_operands = 0 : i64, tpu.core_type = #tpu.core_type<tc>} {
    %0 = tpu.iota {dimensions = array<i32: 0>} : vector<32x1xi32>
    %c16_i32 = arith.constant 16 : i32
    %c0_i32 = arith.constant 0 : i32
    %1 = arith.cmpi eq, %c16_i32, %c0_i32 : i32
    %c1_i32 = arith.constant 1 : i32
    %2 = arith.select %1, %c1_i32, %c16_i32 : i32
    %3 = vector.broadcast %2 : i32 to vector<32x1xi32>
    %4 = arith.remsi %0, %3 : vector<32x1xi32>
    %c0_i32_0 = arith.constant 0 : i32
    %5 = vector.broadcast %c0_i32_0 : i32 to vector<32x1xi32>
    %6 = arith.cmpi ne, %4, %5 : vector<32x1xi32>
    %c0_i32_1 = arith.constant 0 : i32
    %7 = vector.broadcast %c0_i32_1 : i32 to vector<32x1xi32>
    %8 = arith.cmpi slt, %4, %7 : vector<32x1xi32>
    %c0_i32_2 = arith.constant 0 : i32
    %9 = arith.cmpi slt, %2, %c0_i32_2 : i32
    %10 = vector.broadcast %9 : i1 to vector<32x1xi1>
    %11 = vector.broadcast %10 : vector<32x1xi1> to vector<32x1xi1>
    %12 = arith.xori %8, %11 : vector<32x1xi1>
    %13 = arith.andi %12, %6 : vector<32x1xi1>
    %14 = vector.broadcast %2 : i32 to vector<32x1xi32>
    %15 = arith.addi %4, %14 : vector<32x1xi32>
    %16 = arith.select %13, %15, %4 : vector<32x1xi1>, vector<32x1xi32>
    %17 = tpu.iota {dimensions = array<i32: 0>} : vector<128x128xi32>
    %18 = tpu.iota {dimensions = array<i32: 1>} : vector<128x128xi32>
    %c8_i32 = arith.constant 8 : i32
    %c0_i32_3 = arith.constant 0 : i32
    %19 = arith.cmpi eq, %c8_i32, %c0_i32_3 : i32
    %c1_i32_4 = arith.constant 1 : i32
    %20 = arith.select %19, %c1_i32_4, %c8_i32 : i32
    %21 = vector.broadcast %20 : i32 to vector<128x128xi32>
    %22 = arith.remsi %17, %21 : vector<128x128xi32>
    %c0_i32_5 = arith.constant 0 : i32
    %23 = vector.broadcast %c0_i32_5 : i32 to vector<128x128xi32>
    %24 = arith.cmpi ne, %22, %23 : vector<128x128xi32>
    %c0_i32_6 = arith.constant 0 : i32
    %25 = vector.broadcast %c0_i32_6 : i32 to vector<128x128xi32>
    %26 = arith.cmpi slt, %22, %25 : vector<128x128xi32>
    %c0_i32_7 = arith.constant 0 : i32
    %27 = arith.cmpi slt, %20, %c0_i32_7 : i32
    %28 = vector.broadcast %27 : i1 to vector<128x128xi1>
    %29 = vector.broadcast %28 : vector<128x128xi1> to vector<128x128xi1>
    %30 = arith.xori %26, %29 : vector<128x128xi1>
    %31 = arith.andi %30, %24 : vector<128x128xi1>
    %32 = vector.broadcast %20 : i32 to vector<128x128xi32>
    %33 = arith.addi %22, %32 : vector<128x128xi32>
    %34 = arith.select %31, %33, %22 : vector<128x128xi1>, vector<128x128xi32>
    %c8_i32_8 = arith.constant 8 : i32
    %c0_i32_9 = arith.constant 0 : i32
    %35 = arith.cmpi eq, %c8_i32_8, %c0_i32_9 : i32
    %c1_i32_10 = arith.constant 1 : i32
    %36 = arith.select %35, %c1_i32_10, %c8_i32_8 : i32
    %37 = vector.broadcast %36 : i32 to vector<128x128xi32>
    %38 = arith.remsi %18, %37 : vector<128x128xi32>
    %c0_i32_11 = arith.constant 0 : i32
    %39 = vector.broadcast %c0_i32_11 : i32 to vector<128x128xi32>
    %40 = arith.cmpi ne, %38, %39 : vector<128x128xi32>
    %c0_i32_12 = arith.constant 0 : i32
    %41 = vector.broadcast %c0_i32_12 : i32 to vector<128x128xi32>
    %42 = arith.cmpi slt, %38, %41 : vector<128x128xi32>
    %c0_i32_13 = arith.constant 0 : i32
    %43 = arith.cmpi slt, %36, %c0_i32_13 : i32
    %44 = vector.broadcast %43 : i1 to vector<128x128xi1>
    %45 = vector.broadcast %44 : vector<128x128xi1> to vector<128x128xi1>
    %46 = arith.xori %42, %45 : vector<128x128xi1>
    %47 = arith.andi %46, %40 : vector<128x128xi1>
    %48 = vector.broadcast %36 : i32 to vector<128x128xi32>
    %49 = arith.addi %38, %48 : vector<128x128xi32>
    %50 = arith.select %47, %49, %38 : vector<128x128xi1>, vector<128x128xi32>
    %51 = arith.cmpi eq, %34, %50 : vector<128x128xi32>
    %52 = arith.extui %51 : vector<128x128xi1> to vector<128x128xi32>
    %53 = arith.sitofp %52 : vector<128x128xi32> to vector<128x128xf32>
    %c0 = arith.constant 0 : index
    %c0_14 = arith.constant 0 : index
    %54 = vector.load %arg0[%c0, %c0_14] : memref<32x64xf32, #tpu.memory_space<vmem>>, vector<32x64xf32>
    %c1 = arith.constant 1 : index
    %c0_15 = arith.constant 0 : index
    %c0_16 = arith.constant 0 : index
    %55 = vector.load %arg1[%c1, %c0_15, %c0_16] : memref<3x64x128xf32, #tpu.memory_space<vmem>>, vector<1x64x128xf32>
    %56 = vector.shape_cast %55 : vector<1x64x128xf32> to vector<64x128xf32>
    %cst = arith.constant dense<0.000000e+00> : vector<32x128xf32>
    %57 = tpu.matmul %54, %56, %cst {dimension_numbers = #tpu.dot_dimension_numbers<[1], [0], [0], [1], [0, 0, 1, 1], [], []>} : vector<32x64xf32>, vector<64x128xf32>, vector<32x128xf32> -> vector<32x128xf32>
    %c1_i32_17 = arith.constant 1 : i32
    %58 = tpu.dynamic_rotate %54 by %c1_i32_17 dim 0 : vector<32x64xf32>, i32 -> vector<32x64xf32>
    %c1_i32_18 = arith.constant 1 : i32
    %59 = vector.broadcast %c1_i32_18 : i32 to vector<32x1xi32>
    %60 = arith.cmpi sge, %16, %59 : vector<32x1xi32>
    %cst_19 = arith.constant 0.000000e+00 : f32
    %61 = vector.shape_cast %60 : vector<32x1xi1> to vector<32x1xi1>
    %62 = vector.broadcast %61 : vector<32x1xi1> to vector<32x64xi1>
    %63 = vector.broadcast %cst_19 : f32 to vector<32x64xf32>
    %64 = arith.select %62, %58, %63 : vector<32x64xi1>, vector<32x64xf32>
    %c0_20 = arith.constant 0 : index
    %c0_21 = arith.constant 0 : index
    %c0_22 = arith.constant 0 : index
    %65 = vector.load %arg1[%c0_20, %c0_21, %c0_22] : memref<3x64x128xf32, #tpu.memory_space<vmem>>, vector<1x64x128xf32>
    %66 = vector.shape_cast %65 : vector<1x64x128xf32> to vector<64x128xf32>
    %cst_23 = arith.constant dense<0.000000e+00> : vector<32x128xf32>
    %67 = tpu.matmul %64, %66, %cst_23 {dimension_numbers = #tpu.dot_dimension_numbers<[1], [0], [0], [1], [0, 0, 1, 1], [], []>} : vector<32x64xf32>, vector<64x128xf32>, vector<32x128xf32> -> vector<32x128xf32>
    %68 = arith.addf %57, %67 : vector<32x128xf32>
    %c31_i32 = arith.constant 31 : i32
    %69 = tpu.dynamic_rotate %54 by %c31_i32 dim 0 : vector<32x64xf32>, i32 -> vector<32x64xf32>
    %c14_i32 = arith.constant 14 : i32
    %70 = vector.broadcast %c14_i32 : i32 to vector<32x1xi32>
    %71 = arith.cmpi sle, %16, %70 : vector<32x1xi32>
    %cst_24 = arith.constant 0.000000e+00 : f32
    %72 = vector.shape_cast %71 : vector<32x1xi1> to vector<32x1xi1>
    %73 = vector.broadcast %72 : vector<32x1xi1> to vector<32x64xi1>
    %74 = vector.broadcast %cst_24 : f32 to vector<32x64xf32>
    %75 = arith.select %73, %69, %74 : vector<32x64xi1>, vector<32x64xf32>
    %c2 = arith.constant 2 : index
    %c0_25 = arith.constant 0 : index
    %c0_26 = arith.constant 0 : index
    %76 = vector.load %arg1[%c2, %c0_25, %c0_26] : memref<3x64x128xf32, #tpu.memory_space<vmem>>, vector<1x64x128xf32>
    %77 = vector.shape_cast %76 : vector<1x64x128xf32> to vector<64x128xf32>
    %cst_27 = arith.constant dense<0.000000e+00> : vector<32x128xf32>
    %78 = tpu.matmul %75, %77, %cst_27 {dimension_numbers = #tpu.dot_dimension_numbers<[1], [0], [0], [1], [0, 0, 1, 1], [], []>} : vector<32x64xf32>, vector<64x128xf32>, vector<32x128xf32> -> vector<32x128xf32>
    %79 = arith.addf %68, %78 : vector<32x128xf32>
    %cst_28 = arith.constant dense<0.000000e+00> : vector<32x128xf32>
    %80 = tpu.matmul %79, %53, %cst_28 {dimension_numbers = #tpu.dot_dimension_numbers<[1], [0], [0], [1], [0, 0, 1, 1], [], []>} : vector<32x128xf32>, vector<128x128xf32>, vector<32x128xf32> -> vector<32x128xf32>
    %81 = arith.mulf %79, %79 : vector<32x128xf32>
    %cst_29 = arith.constant dense<0.000000e+00> : vector<32x128xf32>
    %82 = tpu.matmul %81, %53, %cst_29 {dimension_numbers = #tpu.dot_dimension_numbers<[1], [0], [0], [1], [0, 0, 1, 1], [], []>} : vector<32x128xf32>, vector<128x128xf32>, vector<32x128xf32> -> vector<32x128xf32>
    %cst_30 = arith.constant dense<0.000000e+00> : vector<128xf32>
    %83 = vector.multi_reduction <add>, %80, %cst_30 [0] : vector<32x128xf32> to vector<128xf32>
    %84 = vector.shape_cast %83 : vector<128xf32> to vector<1x128xf32>
    %cst_31 = arith.constant 0.001953125 : f32
    %85 = vector.broadcast %cst_31 : f32 to vector<1x128xf32>
    %86 = arith.mulf %84, %85 : vector<1x128xf32>
    %cst_32 = arith.constant dense<0.000000e+00> : vector<128xf32>
    %87 = vector.multi_reduction <add>, %82, %cst_32 [0] : vector<32x128xf32> to vector<128xf32>
    %88 = vector.shape_cast %87 : vector<128xf32> to vector<1x128xf32>
    %cst_33 = arith.constant 0.001953125 : f32
    %89 = vector.broadcast %cst_33 : f32 to vector<1x128xf32>
    %90 = arith.mulf %88, %89 : vector<1x128xf32>
    %91 = arith.mulf %86, %86 : vector<1x128xf32>
    %92 = arith.subf %90, %91 : vector<1x128xf32>
    %c0_34 = arith.constant 0 : index
    %c0_35 = arith.constant 0 : index
    %93 = vector.load %arg2[%c0_34, %c0_35] : memref<1x128xf32, #tpu.memory_space<vmem>>, vector<1x128xf32>
    %cst_36 = arith.constant 9.99999974E-6 : f32
    %94 = vector.broadcast %cst_36 : f32 to vector<1x128xf32>
    %95 = arith.addf %92, %94 : vector<1x128xf32>
    %96 = math.rsqrt %95 : vector<1x128xf32>
    %97 = arith.mulf %93, %96 : vector<1x128xf32>
    %c0_37 = arith.constant 0 : index
    %c0_38 = arith.constant 0 : index
    %98 = vector.load %arg3[%c0_37, %c0_38] : memref<1x128xf32, #tpu.memory_space<vmem>>, vector<1x128xf32>
    %99 = arith.mulf %86, %97 : vector<1x128xf32>
    %100 = arith.subf %98, %99 : vector<1x128xf32>
    %101 = vector.broadcast %97 : vector<1x128xf32> to vector<32x128xf32>
    %102 = arith.mulf %79, %101 : vector<32x128xf32>
    %103 = vector.broadcast %100 : vector<1x128xf32> to vector<32x128xf32>
    %104 = arith.addf %102, %103 : vector<32x128xf32>
    %cst_39 = arith.constant 0.000000e+00 : f32
    %105 = vector.broadcast %cst_39 : f32 to vector<32x128xf32>
    %106 = arith.maximumf %104, %105 : vector<32x128xf32>
    %c1_40 = arith.constant 1 : index
    %c0_41 = arith.constant 0 : index
    %c0_42 = arith.constant 0 : index
    %107 = vector.load %arg4[%c1_40, %c0_41, %c0_42] : memref<3x128x128xf32, #tpu.memory_space<vmem>>, vector<1x128x128xf32>
    %108 = vector.shape_cast %107 : vector<1x128x128xf32> to vector<128x128xf32>
    %cst_43 = arith.constant dense<0.000000e+00> : vector<32x128xf32>
    %109 = tpu.matmul %106, %108, %cst_43 {dimension_numbers = #tpu.dot_dimension_numbers<[1], [0], [0], [1], [0, 0, 1, 1], [], []>} : vector<32x128xf32>, vector<128x128xf32>, vector<32x128xf32> -> vector<32x128xf32>
    %c1_i32_44 = arith.constant 1 : i32
    %110 = tpu.dynamic_rotate %106 by %c1_i32_44 dim 0 : vector<32x128xf32>, i32 -> vector<32x128xf32>
    %c1_i32_45 = arith.constant 1 : i32
    %111 = vector.broadcast %c1_i32_45 : i32 to vector<32x1xi32>
    %112 = arith.cmpi sge, %16, %111 : vector<32x1xi32>
    %cst_46 = arith.constant 0.000000e+00 : f32
    %113 = vector.shape_cast %112 : vector<32x1xi1> to vector<32x1xi1>
    %114 = vector.broadcast %113 : vector<32x1xi1> to vector<32x128xi1>
    %115 = vector.broadcast %cst_46 : f32 to vector<32x128xf32>
    %116 = arith.select %114, %110, %115 : vector<32x128xi1>, vector<32x128xf32>
    %c0_47 = arith.constant 0 : index
    %c0_48 = arith.constant 0 : index
    %c0_49 = arith.constant 0 : index
    %117 = vector.load %arg4[%c0_47, %c0_48, %c0_49] : memref<3x128x128xf32, #tpu.memory_space<vmem>>, vector<1x128x128xf32>
    %118 = vector.shape_cast %117 : vector<1x128x128xf32> to vector<128x128xf32>
    %cst_50 = arith.constant dense<0.000000e+00> : vector<32x128xf32>
    %119 = tpu.matmul %116, %118, %cst_50 {dimension_numbers = #tpu.dot_dimension_numbers<[1], [0], [0], [1], [0, 0, 1, 1], [], []>} : vector<32x128xf32>, vector<128x128xf32>, vector<32x128xf32> -> vector<32x128xf32>
    %120 = arith.addf %109, %119 : vector<32x128xf32>
    %c31_i32_51 = arith.constant 31 : i32
    %121 = tpu.dynamic_rotate %106 by %c31_i32_51 dim 0 : vector<32x128xf32>, i32 -> vector<32x128xf32>
    %c14_i32_52 = arith.constant 14 : i32
    %122 = vector.broadcast %c14_i32_52 : i32 to vector<32x1xi32>
    %123 = arith.cmpi sle, %16, %122 : vector<32x1xi32>
    %cst_53 = arith.constant 0.000000e+00 : f32
    %124 = vector.shape_cast %123 : vector<32x1xi1> to vector<32x1xi1>
    %125 = vector.broadcast %124 : vector<32x1xi1> to vector<32x128xi1>
    %126 = vector.broadcast %cst_53 : f32 to vector<32x128xf32>
    %127 = arith.select %125, %121, %126 : vector<32x128xi1>, vector<32x128xf32>
    %c2_54 = arith.constant 2 : index
    %c0_55 = arith.constant 0 : index
    %c0_56 = arith.constant 0 : index
    %128 = vector.load %arg4[%c2_54, %c0_55, %c0_56] : memref<3x128x128xf32, #tpu.memory_space<vmem>>, vector<1x128x128xf32>
    %129 = vector.shape_cast %128 : vector<1x128x128xf32> to vector<128x128xf32>
    %cst_57 = arith.constant dense<0.000000e+00> : vector<32x128xf32>
    %130 = tpu.matmul %127, %129, %cst_57 {dimension_numbers = #tpu.dot_dimension_numbers<[1], [0], [0], [1], [0, 0, 1, 1], [], []>} : vector<32x128xf32>, vector<128x128xf32>, vector<32x128xf32> -> vector<32x128xf32>
    %131 = arith.addf %120, %130 : vector<32x128xf32>
    %cst_58 = arith.constant dense<0.000000e+00> : vector<32x128xf32>
    %132 = tpu.matmul %131, %53, %cst_58 {dimension_numbers = #tpu.dot_dimension_numbers<[1], [0], [0], [1], [0, 0, 1, 1], [], []>} : vector<32x128xf32>, vector<128x128xf32>, vector<32x128xf32> -> vector<32x128xf32>
    %133 = arith.mulf %131, %131 : vector<32x128xf32>
    %cst_59 = arith.constant dense<0.000000e+00> : vector<32x128xf32>
    %134 = tpu.matmul %133, %53, %cst_59 {dimension_numbers = #tpu.dot_dimension_numbers<[1], [0], [0], [1], [0, 0, 1, 1], [], []>} : vector<32x128xf32>, vector<128x128xf32>, vector<32x128xf32> -> vector<32x128xf32>
    %cst_60 = arith.constant dense<0.000000e+00> : vector<128xf32>
    %135 = vector.multi_reduction <add>, %132, %cst_60 [0] : vector<32x128xf32> to vector<128xf32>
    %136 = vector.shape_cast %135 : vector<128xf32> to vector<1x128xf32>
    %cst_61 = arith.constant 0.001953125 : f32
    %137 = vector.broadcast %cst_61 : f32 to vector<1x128xf32>
    %138 = arith.mulf %136, %137 : vector<1x128xf32>
    %cst_62 = arith.constant dense<0.000000e+00> : vector<128xf32>
    %139 = vector.multi_reduction <add>, %134, %cst_62 [0] : vector<32x128xf32> to vector<128xf32>
    %140 = vector.shape_cast %139 : vector<128xf32> to vector<1x128xf32>
    %cst_63 = arith.constant 0.001953125 : f32
    %141 = vector.broadcast %cst_63 : f32 to vector<1x128xf32>
    %142 = arith.mulf %140, %141 : vector<1x128xf32>
    %143 = arith.mulf %138, %138 : vector<1x128xf32>
    %144 = arith.subf %142, %143 : vector<1x128xf32>
    %c0_64 = arith.constant 0 : index
    %c0_65 = arith.constant 0 : index
    %145 = vector.load %arg5[%c0_64, %c0_65] : memref<1x128xf32, #tpu.memory_space<vmem>>, vector<1x128xf32>
    %cst_66 = arith.constant 9.99999974E-6 : f32
    %146 = vector.broadcast %cst_66 : f32 to vector<1x128xf32>
    %147 = arith.addf %144, %146 : vector<1x128xf32>
    %148 = math.rsqrt %147 : vector<1x128xf32>
    %149 = arith.mulf %145, %148 : vector<1x128xf32>
    %c0_67 = arith.constant 0 : index
    %c0_68 = arith.constant 0 : index
    %150 = vector.load %arg6[%c0_67, %c0_68] : memref<1x128xf32, #tpu.memory_space<vmem>>, vector<1x128xf32>
    %151 = arith.mulf %138, %149 : vector<1x128xf32>
    %152 = arith.subf %150, %151 : vector<1x128xf32>
    %153 = vector.broadcast %149 : vector<1x128xf32> to vector<32x128xf32>
    %154 = arith.mulf %131, %153 : vector<32x128xf32>
    %155 = vector.broadcast %152 : vector<1x128xf32> to vector<32x128xf32>
    %156 = arith.addf %154, %155 : vector<32x128xf32>
    %c0_69 = arith.constant 0 : index
    %c0_70 = arith.constant 0 : index
    %157 = vector.load %arg7[%c0_69, %c0_70] : memref<64x128xf32, #tpu.memory_space<vmem>>, vector<64x128xf32>
    %cst_71 = arith.constant dense<0.000000e+00> : vector<32x128xf32>
    %158 = tpu.matmul %54, %157, %cst_71 {dimension_numbers = #tpu.dot_dimension_numbers<[1], [0], [0], [1], [0, 0, 1, 1], [], []>} : vector<32x64xf32>, vector<64x128xf32>, vector<32x128xf32> -> vector<32x128xf32>
    %c0_72 = arith.constant 0 : index
    %c0_73 = arith.constant 0 : index
    %159 = vector.load %arg8[%c0_72, %c0_73] : memref<1x128xf32, #tpu.memory_space<vmem>>, vector<1x128xf32>
    %160 = vector.broadcast %159 : vector<1x128xf32> to vector<32x128xf32>
    %161 = arith.addf %158, %160 : vector<32x128xf32>
    %162 = arith.addf %156, %161 : vector<32x128xf32>
    %cst_74 = arith.constant 0.000000e+00 : f32
    %163 = vector.broadcast %cst_74 : f32 to vector<32x128xf32>
    %164 = arith.maximumf %162, %163 : vector<32x128xf32>
    %c0_75 = arith.constant 0 : index
    %c0_76 = arith.constant 0 : index
    %165 = vector.load %arg9[%c0_75, %c0_76] : memref<32x128xf32, #tpu.memory_space<vmem>>, vector<32x128xf32>
    tpu.vector_store %arg9[%c0_75, %c0_76], %164 {strides = array<i32>} : memref<32x128xf32, #tpu.memory_space<vmem>>, vector<32x128xf32>,
    return
  }
}

</mosaic_0001>

<bundles_post_ra>
// kernel: tpu_custom_call.1
= control target key start
LH: loop header
LB: loop body
LE: loop exit
PB: predicated region body
PF: predicated region fallthrough
CT: control target
= control target key end

     0   :  { %14 = vsyncpa [#allocation3], 0  ;;  %s1905_s0 = inlined_call_operand.hbm [shape: f32[32,64], index: 0, kind: input, shape index: {}]   ;;  %s1906_s1 = inlined_call_operand.hbm [shape: f32[3,64,128], index: 1, kind: input, shape index: {}]   ;;  %s1907_s2 = inlined_call_operand.vmem [shape: f32[1,128], index: 2, kind: input, shape index: {}]   ;;  %s1908_s3 = inlined_call_operand.vmem [shape: f32[1,128], index: 3, kind: input, shape index: {}]   ;;  %s1909_s4 = inlined_call_operand.hbm [shape: f32[3,128,128], index: 4, kind: input, shape index: {}]   ;;  %s1910_s5 = inlined_call_operand.vmem [shape: f32[1,128], index: 5, kind: input, shape index: {}]   ;;  %s1911_s6 = inlined_call_operand.vmem [shape: f32[1,128], index: 6, kind: input, shape index: {}]   ;;  %s1912_s7 = inlined_call_operand.hbm [shape: f32[64,128], index: 7, kind: input, shape index: {}]   ;;  %s1913_s8 = inlined_call_operand.vmem [shape: f32[1,128], index: 8, kind: input, shape index: {}]   ;;  %s1914_s9 = inlined_call_operand.hbm [shape: f32[32,128], index: 9, kind: output, shape index: {}]  }
   0x1   :  { %15 = vsyncpa [#allocation6], 0 }
   0x2   :  { %16 = vsyncpa [#allocation9], 0 }
   0x3   :  { %17 = vsyncpa [#allocation4], 0  ;;  %s35_s11 = sshll.u32 %s1906_s1, 4  ;;  %s1335_s12 = smov [#allocation5]   ;;  %s36_s11 = int_to_ptr.hbm [resolvable:$true] %s35_s11 }
   0x4   :  { %s37_s13 = sshll.u32 %s1335_s12, 4  ;;  %s22_s16 = sshll.u32 %s1905_s0, 4  ;;  %s38_s13 = int_to_ptr.vmem [resolvable:$true] %s37_s13  ;;  %s23_s16 = int_to_ptr.hbm [resolvable:$true] %s22_s16 }
   0x5   :  { %s1336_s17 = smov 128   ;;  %s1337_s18 = smov 8  }
   0x6   :  { %43 = dma.hbm_to_vmem [thread:$0]  %s36_s11, 3072, %s38_s13, [#allocation6], %s1336_s17, %s1336_s17, %s1337_s18  }
   0x7   :  { %s1338_s19 = smov [#allocation2]   ;;  %s52_s1 = sshll.u32 %s1909_s4, 4  ;;  %s53_s1 = int_to_ptr.hbm [resolvable:$true] %s52_s1 }
   0x8   :  { %s24_s20 = sshll.u32 %s1338_s19, 4  ;;  %s69_s24 = sshll.u32 %s1912_s7, 4  ;;  %s25_s20 = int_to_ptr.vmem [resolvable:$true] %s24_s20  ;;  %s70_s24 = int_to_ptr.hbm [resolvable:$true] %s69_s24 }
   0x9   :  { %30 = dma.hbm_to_vmem [thread:$0]  %s23_s16, 512, %s25_s20, [#allocation3], %s1336_s17, %s1336_s17, %s1337_s18  }
   0xa   :  { %s1339_s25 = smov [#allocation7]   ;;  %s1340_s27 = smov [#allocation8]  }
   0xb   :  { %s54_s26 = sshll.u32 %s1339_s25, 4  ;;  %s71_s4 = sshll.u32 %s1340_s27, 4  ;;  %s55_s26 = int_to_ptr.vmem [resolvable:$true] %s54_s26  ;;  %s72_s4 = int_to_ptr.vmem [resolvable:$true] %s71_s4 }
   0xc   :  { %60 = dma.hbm_to_vmem [thread:$0]  %s53_s1, 6144, %s55_s26, [#allocation6], %s1336_s17, %s1336_s17, %s1337_s18  }
   0xd   :  { %77 = dma.hbm_to_vmem [thread:$0]  %s70_s24, 1024, %s72_s4, [#allocation9], %s1336_s17, %s1336_s17, %s1337_s18  }
   0xe   :  { %1327 = dma.done.wait [#allocation3], 512  }
   0xf   :  { %1328 = vsyncadd [#allocation3], 4294966784 }
  0x10   :  { %1329 = dma.done.wait [#allocation6], 9216  }
  0x11   :  { %1330 = vsyncadd [#allocation6], 4294958080 }
  0x12   :  { %1331 = dma.done.wait [#allocation9], 1024  }
  0x13   :  { %1332 = vsyncadd [#allocation9], 4294966272  ;;  %v577_v0 = vld [vmem:[#allocation5 + $0xb8] sm:$0xff]  ;;  %v576_v1 = vld [vmem:[#allocation5 + $0xb0] sm:$0xff]  ;;  %v96_v5 = vlaneseq  ;;  %v1922_v35 = vmov 0  ;;  %vm1916_vm3 = vcmask 523264  }
  0x14   :  { %v460_v2 = vld [vmem:[#allocation5 + $0x38] sm:$0xff]  ;;  %598 = vmatpush.msra.mxu2 %v577_v0  ;;  %v459_v4 = vld [vmem:[#allocation5 + $0x30] sm:$0xff]  ;;  %v575_v6 = vld [vmem:[#allocation5 + $0xa8] sm:$0xff]  ;;  %v1926_v57 = vmov 0  ;;  %v1341_v59 = vmov 1.0   ;;  %s1079_s15 = sshll.u32 %s1914_s9, 4  ;;  %s1080_s15 = int_to_ptr.hbm [resolvable:$true] %s1079_s15 }
  0x15   :  { %482 = vmatpush.msra.mxu0 %v460_v2  ;;  %v427_v3 = vld [vmem:[#allocation5 + $0x78] sm:$0xff]  ;;  %v426_v7 = vld [vmem:[#allocation5 + $0x70] sm:$0xff]  ;;  %v458_v8 = vld [vmem:[#allocation5 + $0x28] sm:$0xff]  ;;  %v1417_v13 = vshrl.u32 %v96_v5, 7  ;;  %v162_v30 = vand.u32 127, %v96_v5 }
  0x16   :  { %523 = vmatpush.msra.mxu1 %v427_v3  ;;  %599 = vmatpush.msra.mxu2 %v576_v1  ;;  %v425_v9 = vld [vmem:[#allocation5 + $0x68] sm:$0xff]  ;;  %v574_v10 = vld [vmem:[#allocation5 + $0xa0] sm:$0xff]  ;;  %v573_v14 = vld [vmem:[#allocation5 + $0x98] sm:$0xff] }
  0x17   :  { %483 = vmatpush.msra.mxu0 %v459_v4  ;;  %v457_v11 = vld [vmem:[#allocation5 + $0x20] sm:$0xff]  ;;  %v456_v15 = vld [vmem:[#allocation5 + $0x18] sm:$0xff]  ;;  %v1421_v18 = vld [vmem:[#allocation2 + $0x8] sm:$0xff]  ;;  %v105_v19 = vand.u32 15, %v1417_v13  ;;  %vm1915_vm0 = vcmp.lt.s32.totalorder %v1417_v13, 1  ;;  %v1430_v25 = vadd.s32 8, %v1417_v13 }
  0x18   :  { %524 = vmatpush.msra.mxu1 %v426_v7  ;;  %600 = vmatpush.msra.mxu2 %v575_v6  ;;  %v424_v12 = vld [vmem:[#allocation5 + $0x60] sm:$0xff]  ;;  %v423_v17 = vld [vmem:[#allocation5 + $0x58] sm:$0xff]  ;;  %v572_v21 = vld [vmem:[#allocation5 + $0x90] sm:$0xff]  ;;  %v545_v27 = vrot.slane %v1421_v18, 1  ;;  %v160_v29 = vadd.s32 120, %v1417_v13  ;;  %vm1917_vm1 = vcmp.lt.s32.totalorder %v1417_v13, 7 }
  0x19   :  { %484 = vmatpush.msra.mxu0 %v458_v8  ;;  %v1419_v16 = vld [vmem:[#allocation2] sm:$0xff]  ;;  %v455_v22 = vld [vmem:[#allocation5 + $0x10] sm:$0xff]  ;;  %v1426_v24 = vld [vmem:[#allocation2 + $0x18] sm:$0xff]  ;;  %vm1442_vm2 = vcmp.ge.s32.totalorder %v105_v19, 1  ;;  %v1448_v38 = vand.u32 7, %v162_v30  ;;  %v112_v43 = vand.u32 15, %v1430_v25 }
  0x1a   :  { %525 = vmatpush.msra.mxu1 %v425_v9  ;;  %601 = vmatpush.msra.mxu2 %v574_v10  ;;  %v428_v20 = vrot.slane %v1419_v16, 7  ;;  %v544_v23 = vrot.slane %v1419_v16, 1  ;;  %v422_v26 = vld [vmem:[#allocation5 + $0x50] sm:$0xff]  ;;  %v431_v28 = vrot.slane %v1426_v24, 7  ;;  %v571_v31 = vld [vmem:[#allocation5 + $0x88] sm:$0xff]  ;;  %v1923_v35 = vsel %vm1442_vm2, 4294967295, %v1922_v35 }
  0x1b   :  { %485 = vmatpush.msra.mxu0 %v457_v11  ;;  %v454_v32 = vld [vmem:[#allocation5 + $0x8] sm:$0xff]  ;;  %v1446_v36 = vld [vmem:[#allocation2 + $0x10] sm:$0xff]  ;;  %v272_v37 = vand.u32 7, %v160_v29  ;;  %v570_v39 = vld [vmem:[#allocation5 + $0x80] sm:$0xff]  ;;  %v159_v46 = vadd.s32 112, %v1417_v13  ;;  %v158_v47 = vadd.s32 104, %v1417_v13 }
  0x1c   :  { %526 = vmatpush.msra.mxu1 %v424_v12  ;;  %602 = vmatpush.msra.mxu2 %v573_v14  ;;  %v421_v33 = vld [vmem:[#allocation5 + $0x48] sm:$0xff]  ;;  %v436_v34 = vsel %vm1915_vm0, %v431_v28, %v428_v20  ;;  %v453_v40 = vld [vmem:[#allocation5] sm:$0xff]  ;;  %v551_v41 = vsel %vm1917_vm1, %v544_v23, %v545_v27  ;;  %v546_v45 = vrot.slane %v1446_v36, 1  ;;  %v157_v49 = vadd.s32 96, %v1417_v13 }
  0x1d   :  { %486 = vmatpush.msra.mxu0 %v456_v15  ;;  %v420_v42 = vld [vmem:[#allocation5 + $0x40] sm:$0xff]  ;;  %v449_v44 = vsel %vm1442_vm2, %v436_v34, 0.0  ;;  %vm1461_vm4 = vcmp.eq.s32.totalorder %v272_v37, %v1448_v38  ;;  %v156_v50 = vadd.s32 88, %v1417_v13  ;;  %v265_v51 = vand.u32 7, %v159_v46 }
  0x1e   :  { %527 = vmatpush.msra.mxu1 %v423_v17  ;;  %603 = vmatpush.msra.mxu2 %v572_v21  ;;  %v258_v52 = vand.u32 7, %v158_v47  ;;  %v1472_v53 = vadd.s32 16, %v1417_v13  ;;  %v251_v54 = vand.u32 7, %v157_v49  ;;  %v155_v55 = vadd.s32 80, %v1417_v13  ;;  %v707_v61 = vld [vmem:[%s1907_s2] sm:$0x1] }
  0x1f   :  { %487 = vmatpush.msra.mxu0 %v455_v22  ;;  %v550_v56 = vsel %vm1917_vm1, %v545_v27, %v546_v45  ;;  %vm1477_vm5 = vcmp.le.s32.totalorder %v112_v43, 14  ;;  %v429_v58 = vrot.slane %v1421_v18, 7  ;;  %1122 = vmatpush.msk.msra.mxu3 %vm1461_vm4, %v1341_v59  ;;  %vm1486_vm6 = vcmp.eq.s32.totalorder %v265_v51, %v1448_v38 }
  0x20   :  { %528 = vmatpush.msra.mxu1 %v422_v26  ;;  %604 = vmatpush.msra.mxu2 %v571_v31  ;;  %v1927_v57 = vsel %vm1477_vm5, 4294967295, %v1926_v57  ;;  %vm1494_vm7 = vcmp.eq.s32.totalorder %v258_v52, %v1448_v38  ;;  %v244_v62 = vand.u32 7, %v156_v50  ;;  %v154_v63 = vadd.s32 72, %v1417_v13 }
  0x21   :  { %488 = vmatpush.msra.mxu0 %v454_v32  ;;  %1123 = vmatpush.msk.msra.mxu3 %vm1486_vm6, %v1341_v59  ;;  %v566_v0 = vsel %vm1477_vm5, %v550_v56, 0.0  ;;  %vm1508_vm8 = vcmp.eq.s32.totalorder %v251_v54, %v1448_v38  ;;  %v237_v2 = vand.u32 7, %v155_v55  ;;  %v153_v3 = vadd.s32 64, %v1417_v13 }
  0x22   :  { %529 = vmatpush.msra.mxu1 %v421_v33  ;;  %605 = vmatpush.msra.mxu2 %v570_v39  ;;  %v435_v4 = vsel %vm1915_vm0, %v428_v20, %v429_v58  ;;  %v119_v5 = vand.u32 15, %v1472_v53  ;;  %v430_v6 = vrot.slane %v1446_v36, 7  ;;  %vm1526_vm9 = vcmp.eq.s32.totalorder %v244_v62, %v1448_v38  ;;  %v720_v20 = vld [vmem:[%s1908_s3] sm:$0x1] }
  0x23   :  { %489 = vmatpush.msra.mxu0 %v453_v40  ;;  %1118 = vmatmul.msk.f32.vlgmr.msra.gmra.mxu2 %vm1916_vm3, %v551_v41  ;;  %v230_v8 = vand.u32 7, %v154_v63  ;;  %v152_v9 = vadd.s32 56, %v1417_v13  ;;  %v547_v10 = vrot.slane %v1426_v24, 1  ;;  %vm1540_vm10 = vcmp.eq.s32.totalorder %v237_v2, %v1448_v38 }
  0x24   :  { %530 = vmatpush.msra.mxu1 %v420_v42  ;;  %1110 = vmatmul.msk.f32.vlgmr.msra.gmra.mxu0 %vm1916_vm3, %v449_v44  ;;  %v223_v12 = vand.u32 7, %v153_v3  ;;  %v151_v14 = vadd.s32 48, %v1417_v13  ;;  %vm1545_vm11 = vcmp.ge.s32.totalorder %v119_v5, 1  ;;  %v1938_v15 = vmov 0 }
  0x25   :  { %1114 = vmatmul.msk.f32.vlgmr.msra.gmra.mxu1 %vm1916_vm3, %v1419_v16  ;;  %1138 = vmatpush.msk.msrb.mxu0 %vm1461_vm4, %v1341_v59  ;;  %v1939_v15 = vsel %vm1545_vm11, 4294967295, %v1938_v15  ;;  %v100_v17 = vadd.s32 24, %v1417_v13  ;;  %v434_v19 = vsel %vm1915_vm0, %v429_v58, %v430_v6  ;;  %vm1559_vm12 = vcmp.eq.s32.totalorder %v230_v8, %v1448_v38 }
  0x26   :  { %1124 = vmatpush.msk.msra.mxu3 %vm1494_vm7, %v1341_v59  ;;  %v216_v21 = vand.u32 7, %v152_v9  ;;  %v150_v22 = vadd.s32 40, %v1417_v13  ;;  %v549_v26 = vsel %vm1917_vm1, %v546_v45, %v547_v10  ;;  %vm1573_vm13 = vcmp.eq.s32.totalorder %v223_v12, %v1448_v38 }
  0x27   :  { %1139 = vmatpush.msk.msrb.mxu0 %vm1486_vm6, %v1341_v59  ;;  %v209_v29 = vand.u32 7, %v151_v14  ;;  %v451_v30 = vsel %vm1545_vm11, %v434_v19, 0.0  ;;  %v126_v31 = vand.u32 15, %v100_v17  ;;  %v149_v34 = vadd.s32 32, %v1417_v13 }
  0x28   :  { %1125 = vmatpush.msk.msra.mxu3 %vm1508_vm8, %v1341_v59  ;;  %vm1586_vm14 = vcmp.eq.s32.totalorder %v216_v21, %v1448_v38  ;;  %v202_v33 = vand.u32 7, %v150_v22  ;;  %v552_v39 = vsel %vm1917_vm1, %v547_v10, %v544_v23  ;;  %v1948_v40 = vmov 0 }
  0x29   :  { %1140 = vmatpush.msk.msrb.mxu0 %vm1494_vm7, %v1341_v59  ;;  %vm1599_vm15 = vcmp.eq.s32.totalorder %v209_v29, %v1448_v38  ;;  %vm1607_vm0 = vcmp.le.s32.totalorder %v126_v31, 14  ;;  %v195_v42 = vand.u32 7, %v149_v34  ;;  %v188_v43 = vand.u32 7, %v100_v17  ;;  %v757_v34 = vld [vmem:[#allocation7 + $0xf8] sm:$0xff] }
  0x2a   :  { %1126 = vmatpush.msk.msra.mxu3 %vm1526_vm9, %v1341_v59  ;;  %v1949_v40 = vsel %vm1607_vm0, 4294967295, %v1948_v40  ;;  %v568_v23 = vsel %vm1607_vm0, %v552_v39, 0.0  ;;  %vm1952_vm1 = vcmp.lt.s32.totalorder %v1417_v13, 1  ;;  %vm1955_vm0 = vcmask 523264   ;;  %815 = vmatpush.msrb.mxu2 %v757_v34  ;;  %v756_v39 = vld [vmem:[#allocation7 + $0xf0] sm:$0xff]  ;;  %v779_v34 = vld [vmem:[#allocation7 + $0x48] sm:$0xff] }
  0x2b   :  { %1119 = vmatmul.msk.f32.gmra.mxu2 %vm1916_vm3, %v566_v0  ;;  %1141 = vmatpush.msk.msrb.mxu0 %vm1508_vm8, %v1341_v59  ;;  %v433_v44 = vsel %vm1952_vm1, %v430_v6, %v431_v28  ;;  %vm1641_vm11 = vcmp.eq.s32.totalorder %v195_v42, %v1448_v38  ;;  %vm1956_vm1 = vmmov %vm1955_vm0  ;;  %vm1653_vm2 = vcmp.eq.s32.totalorder %v188_v43, %v1448_v38  ;;  %v181_v46 = vand.u32 7, %v1472_v53  ;;  %v785_v43 = vld [vmem:[#allocation7 + $0x78] sm:$0xff] }
  0x2c   :  { %1111 = vmatmul.msk.f32.gmra.mxu0 %vm1916_vm3, %v435_v4  ;;  %1127 = vmatpush.msk.msra.mxu3 %vm1540_vm10, %v1341_v59  ;;  %vm1957_vm5 = vmmov %vm1955_vm0  ;;  %v174_v49 = vand.u32 7, %v1430_v25  ;;  %v167_v51 = vand.u32 7, %v1417_v13 }
  0x2d   :  { %1115 = vmatmul.msk.f32.gmra.mxu1 %vm1916_vm3, %v1421_v18  ;;  %1142 = vmatpush.msk.msrb.mxu0 %vm1526_vm9, %v1341_v59 }
  0x2e   :  { %1128 = vmatpush.msk.msra.mxu3 %vm1559_vm12, %v1341_v59  ;;  %816 = vmatpush.msrb.mxu2 %v756_v39 }
  0x2f   :  { %1143 = vmatpush.msk.msrb.mxu0 %vm1540_vm10, %v1341_v59  ;;  %786 = vmatpush.msrb.mxu1 %v785_v43  ;;  %v865_v43 = vld [vmem:[#allocation7 + $0x140] sm:$0xff] }
  0x30   :  { %1129 = vmatpush.msk.msra.mxu3 %vm1573_vm13, %v1341_v59 }
  0x31   :  { %1144 = vmatpush.msk.msrb.mxu0 %vm1559_vm12, %v1341_v59 }
  0x32   :  { %1130 = vmatpush.msk.msra.mxu3 %vm1586_vm14, %v1341_v59 }
  0x33   :  { %1120 = vmatmul.msk.f32.gmra.mxu2 %vm1916_vm3, %v549_v26  ;;  %1145 = vmatpush.msk.msrb.mxu0 %vm1573_vm13, %v1341_v59 }
  0x34   :  { %1112 = vmatmul.msk.f32.gmra.mxu0 %vm1916_vm3, %v451_v30  ;;  %1131 = vmatpush.msk.msra.mxu3 %vm1599_vm15, %v1341_v59 }
  0x35   :  { %1116 = vmatmul.msk.f32.gmra.mxu1 %vm1916_vm3, %v1446_v36  ;;  %vm1618_vm3 = vcmp.eq.s32.totalorder %v202_v33, %v1448_v38  ;;  %1146 = vmatpush.msk.msrb.mxu0 %vm1586_vm14, %v1341_v59 }
  0x36   :  { %1132 = vmatpush.msk.msra.mxu3 %vm1618_vm3, %v1341_v59 }
  0x37   :  { %1147 = vmatpush.msk.msrb.mxu0 %vm1599_vm15, %v1341_v59 }
  0x38   :  { %1133 = vmatpush.msk.msra.mxu3 %vm1641_vm11, %v1341_v59 }
  0x39   :  { %1148 = vmatpush.msk.msrb.mxu0 %vm1618_vm3, %v1341_v59 }
  0x3a   :  { %1134 = vmatpush.msk.msra.mxu3 %vm1653_vm2, %v1341_v59 }
  0x3b   :  { %1121 = vmatmul.msk.f32.gmra.mxu2 %vm1955_vm0, %v568_v23  ;;  %1149 = vmatpush.msk.msrb.mxu0 %vm1641_vm11, %v1341_v59  ;;  %vm1674_vm0 = vcmp.eq.s32.totalorder %v181_v46, %v1448_v38  ;;  %v872_v23 = vld [vmem:[#allocation7 + $0x178] sm:$0xff]  ;;  %v755_v46 = vld [vmem:[#allocation7 + $0xe8] sm:$0xff] }
  0x3c   :  { %1113 = vmatmul.msk.f32.gmra.mxu0 %vm1956_vm1, %v433_v44  ;;  %1135 = vmatpush.msk.msra.mxu3 %vm1674_vm0, %v1341_v59  ;;  %vm1698_vm1 = vcmp.eq.s32.totalorder %v167_v51, %v1448_v38  ;;  %v784_v51 = vld [vmem:[#allocation7 + $0x70] sm:$0xff] }
  0x3d   :  { %1117 = vmatmul.msk.f32.gmra.mxu1 %vm1957_vm5, %v1426_v24  ;;  %1150 = vmatpush.msk.msrb.mxu0 %vm1653_vm2, %v1341_v59  ;;  %vm1686_vm5 = vcmp.eq.s32.totalorder %v174_v49, %v1448_v38  ;;  %v871_v49 = vld [vmem:[#allocation7 + $0x170] sm:$0xff] }
  0x3e   :  { %1136 = vmatpush.msk.msra.mxu3 %vm1686_vm5, %v1341_v59  ;;  %817 = vmatpush.msrb.mxu2 %v755_v46 }
  0x3f   :  { %1151 = vmatpush.msk.msrb.mxu0 %vm1674_vm0, %v1341_v59  ;;  %787 = vmatpush.msrb.mxu1 %v784_v51  ;;  %v864_v51 = vld [vmem:[#allocation7 + $0x138] sm:$0xff] }
  0x40   :  { %1137 = vmatpush.msk.msra.mxu3 %vm1698_vm1, %v1341_v59 }
  0x41   :  { %1152 = vmatpush.msk.msrb.mxu0 %vm1686_vm5, %v1341_v59 }
  0x42   :  { %873 = vmatpush.msrb.mxu3 %v872_v23  ;;  %v749_v23 = vld [vmem:[#allocation7 + $0xb8] sm:$0xff] }
  0x43   :  { %1153 = vmatpush.msk.msrb.mxu0 %vm1698_vm1, %v1341_v59 }
  0x44   :  { %874 = vmatpush.msrb.mxu3 %v871_v49  ;;  %v748_v49 = vld [vmem:[#allocation7 + $0xb0] sm:$0xff] }
  0x45   :  { %1158 = vmatpush.msk.msra.mxu0 %vm1461_vm4, %v1341_v59 }
  0x47   :  { %1159 = vmatpush.msk.msra.mxu0 %vm1486_vm6, %v1341_v59 }
  0x49   :  { %1160 = vmatpush.msk.msra.mxu0 %vm1494_vm7, %v1341_v59 }
  0x4b   :  { %1161 = vmatpush.msk.msra.mxu0 %vm1508_vm8, %v1341_v59 }
  0x4d   :  { %1162 = vmatpush.msk.msra.mxu0 %vm1526_vm9, %v1341_v59 }
  0x4f   :  { %1163 = vmatpush.msk.msra.mxu0 %vm1540_vm10, %v1341_v59 }
  0x51   :  { %1164 = vmatpush.msk.msra.mxu0 %vm1559_vm12, %v1341_v59 }
  0x53   :  { %1165 = vmatpush.msk.msra.mxu0 %vm1573_vm13, %v1341_v59 }
  0x55   :  { %1166 = vmatpush.msk.msra.mxu0 %vm1586_vm14, %v1341_v59 }
  0x57   :  { %1167 = vmatpush.msk.msra.mxu0 %vm1599_vm15, %v1341_v59 }
  0x59   :  { %1168 = vmatpush.msk.msra.mxu0 %vm1618_vm3, %v1341_v59 }
  0x5b   :  { %1169 = vmatpush.msk.msra.mxu0 %vm1641_vm11, %v1341_v59 }
  0x5d   :  { %1170 = vmatpush.msk.msra.mxu0 %vm1653_vm2, %v1341_v59 }
  0x5f   :  { %1171 = vmatpush.msk.msra.mxu0 %vm1674_vm0, %v1341_v59 }
  0x61   :  { %1172 = vmatpush.msk.msra.mxu0 %vm1686_vm5, %v1341_v59 }
  0x63   :  { %1173 = vmatpush.msk.msra.mxu0 %vm1698_vm1, %v1341_v59 }
  0xa1   :  { %v491_v38 = vpop.f32.mrf.mxu0 }
  0xa2   :  { %v532_v52 = vpop.f32.mrf.mxu1 }
  0xa3   :  { %v533_v53 = vadd.f32 %v532_v52, %v491_v38  ;;  %v754_v52 = vld [vmem:[#allocation7 + $0xe0] sm:$0xff] }
  0xa4   :  { %818 = vmatpush.msrb.mxu2 %v754_v52 }
  0xa6   :  { %v607_v54 = vpop.f32.mrf.mxu2 }
  0xa7   :  { %v1753_v55 = vadd.f32 %v607_v54, %v533_v53  ;;  %v870_v54 = vld [vmem:[#allocation7 + $0x168] sm:$0xff] }
  0xa8   :  { %875 = vmatpush.msrb.mxu3 %v870_v54  ;;  %v747_v54 = vld [vmem:[#allocation7 + $0xa8] sm:$0xff] }
  0xa9   :  { %639 = vmatmul.f32.vlgmr.msra.gmra.mxu3 %v1753_v55  ;;  %v652_v56 = vmul.f32 %v1753_v55, %v1753_v55  ;;  %v494_v58 = vpop.f32.mrf.mxu0 }
  0xaa   :  { %v535_v62 = vpop.f32.mrf.mxu1 }
  0xab   :  { %672 = vmatmul.f32.vlgmr.msrb.gmra.mxu0 %v652_v56  ;;  %v536_v63 = vadd.f32 %v535_v62, %v494_v58  ;;  %v783_v56 = vld [vmem:[#allocation7 + $0x68] sm:$0xff] }
  0xac   :  { %788 = vmatpush.msrb.mxu1 %v783_v56  ;;  %v863_v56 = vld [vmem:[#allocation7 + $0x130] sm:$0xff] }
  0xae   :  { %v610_v0 = vpop.f32.mrf.mxu2 }
  0xaf   :  { %v1761_v2 = vadd.f32 %v610_v0, %v536_v63  ;;  %v753_v63 = vld [vmem:[#allocation7 + $0xd8] sm:$0xff]  ;;  %v869_v0 = vld [vmem:[#allocation7 + $0x160] sm:$0xff] }
  0xb0   :  { %819 = vmatpush.msrb.mxu2 %v753_v63  ;;  %876 = vmatpush.msrb.mxu3 %v869_v0  ;;  %v746_v63 = vld [vmem:[#allocation7 + $0xa0] sm:$0xff]  ;;  %v862_v0 = vld [vmem:[#allocation7 + $0x128] sm:$0xff] }
  0xb1   :  { %642 = vmatmul.f32.gmra.mxu3 %v1761_v2  ;;  %v653_v3 = vmul.f32 %v1761_v2, %v1761_v2  ;;  %v497_v4 = vpop.f32.mrf.mxu0 }
  0xb2   :  { %v538_v5 = vpop.f32.mrf.mxu1 }
  0xb3   :  { %675 = vmatmul.f32.gmra.mxu0 %v653_v3  ;;  %v539_v6 = vadd.f32 %v538_v5, %v497_v4  ;;  %v782_v3 = vld [vmem:[#allocation7 + $0x60] sm:$0xff] }
  0xb4   :  { %789 = vmatpush.msrb.mxu1 %v782_v3  ;;  %v775_v3 = vld [vmem:[#allocation7 + $0x28] sm:$0xff] }
  0xb6   :  { %v613_v8 = vpop.f32.mrf.mxu2 }
  0xb7   :  { %v1766_v9 = vadd.f32 %v613_v8, %v539_v6  ;;  %v752_v6 = vld [vmem:[#allocation7 + $0xd0] sm:$0xff] }
  0xb8   :  { %820 = vmatpush.msrb.mxu2 %v752_v6  ;;  %v745_v6 = vld [vmem:[#allocation7 + $0x98] sm:$0xff] }
  0xb9   :  { %645 = vmatmul.f32.gmra.mxu3 %v1766_v9  ;;  %v654_v10 = vmul.f32 %v1766_v9, %v1766_v9  ;;  %v500_v12 = vpop.f32.mrf.mxu0 }
  0xba   :  { %v541_v14 = vpop.f32.mrf.mxu1 }
  0xbb   :  { %678 = vmatmul.f32.gmra.mxu0 %v654_v10  ;;  %v542_v17 = vadd.f32 %v541_v14, %v500_v12  ;;  %v868_v10 = vld [vmem:[#allocation7 + $0x158] sm:$0xff] }
  0xbc   :  { %v781_v12 = vld [vmem:[#allocation7 + $0x58] sm:$0xff]  ;;  %877 = vmatpush.msrb.mxu3 %v868_v10  ;;  %v774_v10 = vld [vmem:[#allocation7 + $0x20] sm:$0xff] }
  0xbd   :  { %790 = vmatpush.msrb.mxu1 %v781_v12 }
  0xbe   :  { %v616_v19 = vpop.f32.mrf.mxu2 }
  0xbf   :  { %v1771_v21 = vadd.f32 %v616_v19, %v542_v17  ;;  %v751_v19 = vld [vmem:[#allocation7 + $0xc8] sm:$0xff] }
  0xc0   :  { %821 = vmatpush.msrb.mxu2 %v751_v19  ;;  %v773_v19 = vld [vmem:[#allocation7 + $0x18] sm:$0xff] }
  0xc1   :  { %648 = vmatmul.f32.gmra.mxu3 %v1771_v21  ;;  %v655_v22 = vmul.f32 %v1771_v21, %v1771_v21 }
  0xc3   :  { %681 = vmatmul.f32.gmra.mxu0 %v655_v22  ;;  %v867_v22 = vld [vmem:[#allocation7 + $0x150] sm:$0xff] }
  0xc4   :  { %878 = vmatpush.msrb.mxu3 %v867_v22  ;;  %v743_v22 = vld [vmem:[#allocation7 + $0x88] sm:$0xff] }
 0x128   :  { %v673_v26 = vpop.f32.mrf.mxu0 }
 0x12c   :  { %v640_v29 = vpop.f32.mrf.mxu3 }
 0x130   :  { %v676_v30 = vpop.f32.mrf.mxu0 }
 0x131   :  { %v695_v44 = vadd.f32 %v676_v30, %v673_v26  ;;  %v780_v26 = vld [vmem:[#allocation7 + $0x50] sm:$0xff] }
 0x132   :  { %791 = vmatpush.msrb.mxu1 %v780_v26  ;;  %v859_v26 = vld [vmem:[#allocation7 + $0x110] sm:$0xff] }
 0x134   :  { %v643_v31 = vpop.f32.mrf.mxu3  ;;  %792 = vmatpush.msrb.mxu1 %v779_v34  ;;  %v858_v34 = vld [vmem:[#allocation7 + $0x108] sm:$0xff] }
 0x135   :  { %v685_v58 = vadd.f32 %v643_v31, %v640_v29  ;;  %v750_v31 = vld [vmem:[#allocation7 + $0xc0] sm:$0xff] }
 0x136   :  { %822 = vmatpush.msrb.mxu2 %v750_v31 }
 0x138   :  { %v679_v33 = vpop.f32.mrf.mxu0  ;;  %823 = vmatpush.msrb.mxu2 %v749_v23 }
 0x139   :  { %v696_v38 = vadd.f32 %v695_v44, %v679_v33  ;;  %v866_v33 = vld [vmem:[#allocation7 + $0x148] sm:$0xff]  ;;  %v778_v44 = vld [vmem:[#allocation7 + $0x40] sm:$0xff] }
 0x13a   :  { %879 = vmatpush.msrb.mxu3 %v866_v33  ;;  %793 = vmatpush.msrb.mxu1 %v778_v44  ;;  %v742_v33 = vld [vmem:[#allocation7 + $0x80] sm:$0xff] }
 0x13b   :  { %824 = vmatpush.msrb.mxu2 %v748_v49  ;;  %v770_v44 = vld [vmem:[#allocation7] sm:$0xff] }
 0x13c   :  { %v646_v42 = vpop.f32.mrf.mxu3  ;;  %880 = vmatpush.msrb.mxu3 %v865_v43  ;;  %v857_v43 = vld [vmem:[#allocation7 + $0x100] sm:$0xff] }
 0x13d   :  { %v686_v4 = vadd.f32 %v685_v58, %v646_v42  ;;  %825 = vmatpush.msrb.mxu2 %v747_v54  ;;  %v776_v58 = vld [vmem:[#allocation7 + $0x30] sm:$0xff] }
 0x13e   :  { %881 = vmatpush.msrb.mxu3 %v864_v51 }
 0x13f   :  { %826 = vmatpush.msrb.mxu2 %v746_v63 }
 0x140   :  { %v682_v53 = vpop.f32.mrf.mxu0  ;;  %882 = vmatpush.msrb.mxu3 %v863_v56 }
 0x141   :  { %v697_v62 = vadd.f32 %v696_v38, %v682_v53  ;;  %v777_v38 = vld [vmem:[#allocation7 + $0x38] sm:$0xff]  ;;  %827 = vmatpush.msrb.mxu2 %v745_v6 }
 0x142   :  { %794 = vmatpush.msrb.mxu1 %v777_v38  ;;  %883 = vmatpush.msrb.mxu3 %v862_v0 }
 0x143   :  { %v698_v5 = vrot.slane %v697_v62, 4 }
 0x144   :  { %v649_v8 = vpop.f32.mrf.mxu3  ;;  %795 = vmatpush.msrb.mxu1 %v776_v58 }
 0x145   :  { %v699_v14 = vadd.f32 %v698_v5, %v697_v62  ;;  %v687_v17 = vadd.f32 %v686_v4, %v649_v8  ;;  %v861_v8 = vld [vmem:[#allocation7 + $0x120] sm:$0xff] }
 0x146   :  { %796 = vmatpush.msrb.mxu1 %v775_v3  ;;  %884 = vmatpush.msrb.mxu3 %v861_v8 }
 0x147   :  { %v700_v29 = vrot.slane %v699_v14, 2  ;;  %v688_v30 = vrot.slane %v687_v17, 4 }
 0x148   :  { %797 = vmatpush.msrb.mxu1 %v774_v10 }
 0x149   :  { %v701_v39 = vadd.f32 %v700_v29, %v699_v14  ;;  %v689_v42 = vadd.f32 %v688_v30, %v687_v17  ;;  %v744_v14 = vld [vmem:[#allocation7 + $0x90] sm:$0xff]  ;;  %v860_v17 = vld [vmem:[#allocation7 + $0x118] sm:$0xff] }
 0x14a   :  { %828 = vmatpush.msrb.mxu2 %v744_v14  ;;  %v772_v29 = vld [vmem:[#allocation7 + $0x10] sm:$0xff]  ;;  %885 = vmatpush.msrb.mxu3 %v860_v17  ;;  %v1027_v14 = vld [vmem:[#allocation8 + $0x38] sm:$0xff] }
 0x14b   :  { %v690_v46 = vrot.slane %v689_v42, 2  ;;  %v702_v52 = vrot.slane %v701_v39, 1  ;;  %798 = vmatpush.msrb.mxu1 %v773_v19  ;;  %v1026_v17 = vld [vmem:[#allocation8 + $0x30] sm:$0xff]  ;;  %v1025_v19 = vld [vmem:[#allocation8 + $0x28] sm:$0xff] }
 0x14c   :  { %829 = vmatpush.msrb.mxu2 %v743_v22  ;;  %886 = vmatpush.msrb.mxu3 %v859_v26 }
 0x14d   :  { %v691_v53 = vadd.f32 %v690_v46, %v689_v42  ;;  %v703_v4 = vadd.f32 %v702_v52, %v701_v39  ;;  %v771_v39 = vld [vmem:[#allocation7 + $0x8] sm:$0xff]  ;;  %799 = vmatpush.msrb.mxu1 %v772_v29  ;;  %v1023_v29 = vld [vmem:[#allocation8 + $0x18] sm:$0xff] }
 0x14e   :  { %830 = vmatpush.msrb.mxu2 %v742_v33  ;;  %887 = vmatpush.msrb.mxu3 %v858_v34 }
 0x14f   :  { %v692_v62 = vrot.slane %v691_v53, 1  ;;  %v704_v30 = vmul.f32 0.001953125, %v703_v4  ;;  %800 = vmatpush.msrb.mxu1 %v771_v39 }
 0x150   :  { %888 = vmatpush.msrb.mxu3 %v857_v43  ;;  %1040 = vmatpush.msra.mxu2 %v1027_v14 }
 0x151   :  { %v693_v5 = vadd.f32 %v692_v62, %v691_v53  ;;  %801 = vmatpush.msrb.mxu1 %v770_v44 }
 0x152   :  { %1041 = vmatpush.msra.mxu2 %v1026_v17 }
 0x153   :  { %v694_v12 = vmul.f32 0.001953125, %v693_v5  ;;  %1174 = vmatpush.msk.msra.mxu1 %vm1461_vm4, %v1341_v59 }
 0x154   :  { %1042 = vmatpush.msra.mxu2 %v1025_v19 }
 0x155   :  { %v705_v31 = vmul.f32 %v694_v12, %v694_v12  ;;  %1175 = vmatpush.msk.msra.mxu1 %vm1486_vm6, %v1341_v59 }
 0x157   :  { %v706_v42 = vsub.f32 %v704_v30, %v705_v31  ;;  %1176 = vmatpush.msk.msra.mxu1 %vm1494_vm7, %v1341_v59  ;;  %v1022_v30 = vld [vmem:[#allocation8 + $0x10] sm:$0xff] }
 0x159   :  { %v708_v23 = vadd.f32 1e-05, %v706_v42  ;;  %1177 = vmatpush.msk.msra.mxu1 %vm1508_vm8, %v1341_v59  ;;  %vm1968_vm8 = vnez %v1923_v35 }
 0x15b   :  { %1203 = vrsqrt.f32 %v708_v23  ;;  %1178 = vmatpush.msk.msra.mxu1 %vm1526_vm9, %v1341_v59  ;;  %vm715_vm6 = vweird.f32 %v708_v23 }
 0x15d   :  { %1179 = vmatpush.msk.msra.mxu1 %vm1540_vm10, %v1341_v59 }
 0x15f   :  { %1180 = vmatpush.msk.msra.mxu1 %vm1559_vm12, %v1341_v59 }
 0x161   :  { %v1204_v46 = vpop.eup %1203  ;;  %1181 = vmatpush.msk.msra.mxu1 %vm1573_vm13, %v1341_v59 }
 0x162   :  { %v710_v49 = vmul.f32 %v1204_v46, %v708_v23  ;;  %vm716_vm4 = vweird.f32 %v1204_v46 }
 0x163   :  { %vm717_vm7 = vmor %vm715_vm6, %vm716_vm4  ;;  %1182 = vmatpush.msk.msra.mxu1 %vm1586_vm14, %v1341_v59  ;;  %vm1974_vm14 = vnez %v1939_v15  ;;  %v1024_v15 = vld [vmem:[#allocation8 + $0x20] sm:$0xff] }
 0x164   :  { %v711_v51 = vmul.f32 %v1204_v46, %v710_v49  ;;  %1043 = vmatpush.msra.mxu2 %v1024_v15 }
 0x165   :  { %1183 = vmatpush.msk.msra.mxu1 %vm1599_vm15, %v1341_v59 }
 0x166   :  { %v712_v48 = vmul.f32 0.5, %v711_v51  ;;  %1044 = vmatpush.msra.mxu2 %v1023_v29 }
 0x167   :  { %1184 = vmatpush.msk.msra.mxu1 %vm1618_vm3, %v1341_v59  ;;  %vm1967_vm3 = vcmp.lt.s32.totalorder %v1417_v13, 7 }
 0x168   :  { %v713_v60 = vsub.f32 1.5, %v712_v48  ;;  %vm1970_vm10 = vmmov %vm1967_vm3  ;;  %1045 = vmatpush.msra.mxu2 %v1022_v30 }
 0x169   :  { %1185 = vmatpush.msk.msra.mxu1 %vm1641_vm11, %v1341_v59  ;;  %vm1971_vm11 = vnez %v1927_v57  ;;  %vm1973_vm13 = vmmov %vm1967_vm3 }
 0x16a   :  { %v714_v1 = vmul.f32 %v1204_v46, %v713_v60 }
 0x16b   :  { %1186 = vmatpush.msk.msra.mxu1 %vm1653_vm2, %v1341_v59  ;;  %vm1966_vm2 = vcmp.lt.s32.totalorder %v1417_v13, 1  ;;  %v1021_v13 = vld [vmem:[#allocation8 + $0x8] sm:$0xff] }
 0x16c   :  { %v718_v7 = vsel %vm717_vm7, %v1204_v46, %v714_v1  ;;  %vm1969_vm9 = vmmov %vm1966_vm2  ;;  %1046 = vmatpush.msra.mxu2 %v1021_v13 }
 0x16d   :  { %v719_v11 = vmul.f32 %v718_v7, %v707_v61  ;;  %1187 = vmatpush.msk.msra.mxu1 %vm1674_vm0, %v1341_v59  ;;  %vm1972_vm12 = vmmov %vm1966_vm2 }
 0x16e   :  { %vm1975_vm15 = vmmov %vm1966_vm2 }
 0x16f   :  { %v721_v38 = vmul.f32 %v719_v11, %v694_v12  ;;  %v724_v52 = vperm.slane %v719_v11, 0  ;;  %1188 = vmatpush.msk.msra.mxu1 %vm1686_vm5, %v1341_v59  ;;  %vm1976_vm0 = vmmov %vm1967_vm3  ;;  %vm1977_vm5 = vnez %v1949_v40  ;;  %v1020_v40 = vld [vmem:[#allocation8] sm:$0xff] }
 0x170   :  { %1047 = vmatpush.msra.mxu2 %v1020_v40  ;;  %v1003_v40 = vld [vmem:[%s1911_s6] sm:$0x1] }
 0x171   :  { %v722_v27 = vsub.f32 %v720_v20, %v721_v38  ;;  %v726_v53 = vmul.f32 %v724_v52, %v1753_v55  ;;  %v729_v54 = vmul.f32 %v724_v52, %v1771_v21  ;;  %v727_v56 = vmul.f32 %v724_v52, %v1761_v2  ;;  %1189 = vmatpush.msk.msra.mxu1 %vm1698_vm1, %v1341_v59 }
 0x172   :  { %v728_v62 = vmul.f32 %v724_v52, %v1766_v9  ;;  %vm1978_vm1 = vcmask 523264  }
 0x173   :  { %v731_v32 = vperm.slane %v722_v27, 0  ;;  %vm1979_vm4 = vmmov %vm1978_vm1 }
 0x174   :  { %vm1980_vm6 = vmmov %vm1978_vm1 }
 0x175   :  { %v733_v37 = vadd.f32 %v731_v32, %v726_v53  ;;  %v736_v58 = vadd.f32 %v731_v32, %v729_v54  ;;  %v734_v41 = vadd.f32 %v731_v32, %v727_v56  ;;  %v735_v0 = vadd.f32 %v731_v32, %v728_v62  ;;  %vm1981_vm7 = vmmov %vm1978_vm1 }
 0x177   :  { %v737_v45 = vmax.f32 %v733_v37, 0.0  ;;  %v740_v63 = vmax.f32 %v736_v58, 0.0  ;;  %v738_v55 = vmax.f32 %v734_v41, 0.0  ;;  %v739_v4 = vmax.f32 %v735_v0, 0.0 }
 0x179   :  { %831 = vmatmul.f32.vlgmr.msrb.gmra.mxu2 %v737_v45  ;;  %v758_v28 = vrot.slane %v737_v45, 7  ;;  %v761_v2 = vrot.slane %v740_v63, 7  ;;  %v844_v21 = vrot.slane %v737_v45, 1  ;;  %v845_v3 = vrot.slane %v738_v55, 1 }
 0x17a   :  { %v759_v50 = vrot.slane %v738_v55, 7  ;;  %v846_v5 = vrot.slane %v739_v4, 1  ;;  %v760_v25 = vrot.slane %v739_v4, 7  ;;  %v847_v8 = vrot.slane %v740_v63, 1 }
 0x17b   :  { %v765_v47 = vsel %vm1966_vm2, %v761_v2, %v758_v28  ;;  %v850_v9 = vsel %vm1967_vm3, %v844_v21, %v845_v3 }
 0x17c   :  { %1154 = vmatmul.msk.f32.vlgmr.msrb.gmra.mxu1 %vm1968_vm8, %v765_v47  ;;  %889 = vmatmul.f32.vlgmr.msrb.gmra.mxu3 %v850_v9  ;;  %v764_v6 = vsel %vm1969_vm9, %v758_v28, %v759_v50  ;;  %v849_v59 = vsel %vm1970_vm10, %v845_v3, %v846_v5  ;;  %v763_v35 = vsel %vm1972_vm12, %v759_v50, %v760_v25 }
 0x17d   :  { %v848_v10 = vsel %vm1973_vm13, %v846_v5, %v847_v8  ;;  %v762_v12 = vsel %vm1975_vm15, %v760_v25, %v761_v2  ;;  %v851_v57 = vsel %vm1976_vm0, %v847_v8, %v844_v21 }
 0x181   :  { %834 = vmatmul.f32.gmra.mxu2 %v738_v55 }
 0x184   :  { %805 = vmatmul.f32.gmra.mxu1 %v764_v6  ;;  %1156 = vmatmul.msk.f32.gmra.mxu3 %vm1971_vm11, %v849_v59 }
 0x189   :  { %837 = vmatmul.f32.gmra.mxu2 %v739_v4 }
 0x18c   :  { %1155 = vmatmul.msk.f32.gmra.mxu1 %vm1974_vm14, %v763_v35  ;;  %895 = vmatmul.f32.gmra.mxu3 %v848_v10 }
 0x191   :  { %840 = vmatmul.f32.gmra.mxu2 %v740_v63 }
 0x194   :  { %811 = vmatmul.f32.gmra.mxu1 %v762_v12  ;;  %1157 = vmatmul.msk.f32.gmra.mxu3 %vm1977_vm5, %v851_v57 }
 0x199   :  { %1190 = vmatmul.msk.f32.vlgmr.msra.gmra.mxu2 %vm1978_vm1, %v1419_v16 }
 0x1a1   :  { %1191 = vmatmul.msk.f32.gmra.mxu2 %vm1979_vm4, %v1421_v18 }
 0x1a9   :  { %1192 = vmatmul.msk.f32.gmra.mxu2 %vm1980_vm6, %v1446_v36 }
 0x1b1   :  { %1193 = vmatmul.msk.f32.gmra.mxu2 %vm1981_vm7, %v1426_v24 }
 0x1f9   :  { %v803_v22 = vpop.f32.mrf.mxu1 }
 0x1fc   :  { %v832_v26 = vpop.f32.mrf.mxu2 }
 0x1fd   :  { %v833_v31 = vadd.f32 %v832_v26, %v803_v22 }
 0x1ff   :  { %v890_v33 = vpop.f32.mrf.mxu3 }
 0x200   :  { %v1858_v34 = vadd.f32 %v890_v33, %v833_v31  ;;  %v990_v31 = vld [vmem:[%s1910_s5] sm:$0x1]  ;;  %s1342_s5 = smov [#allocation10]  }
 0x201   :  { %v806_v39 = vpop.f32.mrf.mxu1  ;;  %s1077_s6 = sshll.u32 %s1342_s5, 4  ;;  %s1078_s6 = int_to_ptr.vmem [resolvable:$true] %s1077_s6 }
 0x202   :  { %v935_v42 = vmul.f32 %v1858_v34, %v1858_v34  ;;  %922 = vmatmul.f32.vlgmr.msra.gmra.mxu0 %v1858_v34 }
 0x204   :  { %v835_v23 = vpop.f32.mrf.mxu2  ;;  %955 = vmatmul.f32.vlgmr.msra.gmra.mxu1 %v935_v42 }
 0x205   :  { %v836_v43 = vadd.f32 %v835_v23, %v806_v39 }
 0x207   :  { %v893_v44 = vpop.f32.mrf.mxu3 }
 0x208   :  { %v1865_v46 = vadd.f32 %v893_v44, %v836_v43  ;;  %v1202_v43 = vld [vmem:[%s1913_s8] ss:$0 sm:$0xff] }
 0x209   :  { %v809_v49 = vpop.f32.mrf.mxu1 }
 0x20a   :  { %925 = vmatmul.f32.gmra.mxu0 %v1865_v46  ;;  %v936_v51 = vmul.f32 %v1865_v46, %v1865_v46 }
 0x20c   :  { %v838_v48 = vpop.f32.mrf.mxu2  ;;  %958 = vmatmul.f32.gmra.mxu1 %v936_v51 }
 0x20d   :  { %v839_v60 = vadd.f32 %v838_v48, %v809_v49 }
 0x20f   :  { %v896_v61 = vpop.f32.mrf.mxu3 }
 0x210   :  { %v1872_v1 = vadd.f32 %v896_v61, %v839_v60 }
 0x211   :  { %v812_v7 = vpop.f32.mrf.mxu1 }
 0x212   :  { %928 = vmatmul.f32.gmra.mxu0 %v1872_v1  ;;  %v937_v16 = vmul.f32 %v1872_v1, %v1872_v1 }
 0x214   :  { %v841_v11 = vpop.f32.mrf.mxu2  ;;  %961 = vmatmul.f32.gmra.mxu1 %v937_v16 }
 0x215   :  { %v842_v20 = vadd.f32 %v841_v11, %v812_v7 }
 0x217   :  { %v899_v38 = vpop.f32.mrf.mxu3 }
 0x218   :  { %v1879_v52 = vadd.f32 %v899_v38, %v842_v20 }
 0x21a   :  { %931 = vmatmul.f32.gmra.mxu0 %v1879_v52  ;;  %v938_v18 = vmul.f32 %v1879_v52, %v1879_v52 }
 0x21c   :  { %964 = vmatmul.f32.gmra.mxu1 %v938_v18  ;;  %v1049_v59 = vpop.f32.mrf.mxu2 }
 0x21d   :  { %v1050_v7 = vadd.f32 %v1202_v43, %v1049_v59 }
 0x224   :  { %v1052_v14 = vpop.f32.mrf.mxu2 }
 0x225   :  { %v1053_v11 = vadd.f32 %v1202_v43, %v1052_v14 }
 0x22c   :  { %v1055_v22 = vpop.f32.mrf.mxu2 }
 0x22d   :  { %v1056_v20 = vadd.f32 %v1202_v43, %v1055_v22 }
 0x234   :  { %v1058_v23 = vpop.f32.mrf.mxu2 }
 0x235   :  { %v1059_v51 = vadd.f32 %v1202_v43, %v1058_v23 }
 0x27f   :  { %v923_v27 = vpop.f32.mrf.mxu0 }
 0x281   :  { %v956_v32 = vpop.f32.mrf.mxu1 }
 0x287   :  { %v926_v53 = vpop.f32.mrf.mxu0 }
 0x288   :  { %v968_v36 = vadd.f32 %v926_v53, %v923_v27 }
 0x289   :  { %v959_v54 = vpop.f32.mrf.mxu1 }
 0x28a   :  { %v978_v58 = vadd.f32 %v959_v54, %v956_v32 }
 0x28f   :  { %v929_v56 = vpop.f32.mrf.mxu0 }
 0x290   :  { %v969_v41 = vadd.f32 %v968_v36, %v929_v56 }
 0x291   :  { %v962_v37 = vpop.f32.mrf.mxu1 }
 0x292   :  { %v979_v45 = vadd.f32 %v978_v58, %v962_v37 }
 0x297   :  { %v932_v62 = vpop.f32.mrf.mxu0 }
 0x298   :  { %v970_v63 = vadd.f32 %v969_v41, %v932_v62 }
 0x299   :  { %v965_v55 = vpop.f32.mrf.mxu1 }
 0x29a   :  { %v971_v0 = vrot.slane %v970_v63, 4  ;;  %v980_v28 = vadd.f32 %v979_v45, %v965_v55 }
 0x29c   :  { %v972_v2 = vadd.f32 %v971_v0, %v970_v63  ;;  %v981_v21 = vrot.slane %v980_v28, 4 }
 0x29e   :  { %v973_v3 = vrot.slane %v972_v2, 2  ;;  %v982_v47 = vadd.f32 %v981_v21, %v980_v28 }
 0x2a0   :  { %v974_v24 = vadd.f32 %v973_v3, %v972_v2  ;;  %v983_v9 = vrot.slane %v982_v47, 2 }
 0x2a2   :  { %v975_v4 = vrot.slane %v974_v24, 1  ;;  %v984_v50 = vadd.f32 %v983_v9, %v982_v47 }
 0x2a4   :  { %v976_v5 = vadd.f32 %v975_v4, %v974_v24  ;;  %v985_v6 = vrot.slane %v984_v50, 1 }
 0x2a6   :  { %v977_v25 = vmul.f32 0.001953125, %v976_v5  ;;  %v986_v8 = vadd.f32 %v985_v6, %v984_v50 }
 0x2a8   :  { %v988_v35 = vmul.f32 %v977_v25, %v977_v25  ;;  %v987_v10 = vmul.f32 0.001953125, %v986_v8 }
 0x2aa   :  { %v989_v12 = vsub.f32 %v987_v10, %v988_v35 }
 0x2ac   :  { %v991_v57 = vadd.f32 1e-05, %v989_v12 }
 0x2ae   :  { %1205 = vrsqrt.f32 %v991_v57  ;;  %vm998_vm3 = vweird.f32 %v991_v57 }
 0x2b4   :  { %v1206_v17 = vpop.eup %1205 }
 0x2b5   :  { %v993_v19 = vmul.f32 %v1206_v17, %v991_v57  ;;  %vm999_vm2 = vweird.f32 %v1206_v17 }
 0x2b6   :  { %vm1000_vm8 = vmor %vm998_vm3, %vm999_vm2 }
 0x2b7   :  { %v994_v15 = vmul.f32 %v1206_v17, %v993_v19 }
 0x2b9   :  { %v995_v26 = vmul.f32 0.5, %v994_v15 }
 0x2bb   :  { %v996_v29 = vsub.f32 1.5, %v995_v26 }
 0x2bd   :  { %v997_v30 = vmul.f32 %v1206_v17, %v996_v29 }
 0x2bf   :  { %v1001_v13 = vsel %vm1000_vm8, %v1206_v17, %v997_v30 }
 0x2c0   :  { %v1002_v33 = vmul.f32 %v1001_v13, %v990_v31 }
 0x2c2   :  { %v1004_v39 = vmul.f32 %v1002_v33, %v977_v25  ;;  %v1007_v42 = vperm.slane %v1002_v33, 0 }
 0x2c4   :  { %v1005_v44 = vsub.f32 %v1003_v40, %v1004_v39  ;;  %v1009_v49 = vmul.f32 %v1007_v42, %v1858_v34  ;;  %v1010_v60 = vmul.f32 %v1007_v42, %v1865_v46  ;;  %v1011_v61 = vmul.f32 %v1007_v42, %v1872_v1 }
 0x2c5   :  { %v1012_v16 = vmul.f32 %v1007_v42, %v1879_v52 }
 0x2c6   :  { %v1014_v48 = vperm.slane %v1005_v44, 0 }
 0x2c8   :  { %v1016_v38 = vadd.f32 %v1014_v48, %v1009_v49  ;;  %v1017_v18 = vadd.f32 %v1014_v48, %v1010_v60  ;;  %v1018_v27 = vadd.f32 %v1014_v48, %v1011_v61  ;;  %v1019_v32 = vadd.f32 %v1014_v48, %v1012_v16 }
 0x2ca   :  { %v1061_v53 = vadd.f32 %v1050_v7, %v1016_v38  ;;  %v1062_v54 = vadd.f32 %v1053_v11, %v1017_v18  ;;  %v1063_v56 = vadd.f32 %v1056_v20, %v1018_v27  ;;  %v1064_v37 = vadd.f32 %v1059_v51, %v1019_v32 }
 0x2cc   :  { %v1065_v34 = vmax.f32 %v1061_v53, 0.0  ;;  %v1066_v36 = vmax.f32 %v1062_v54, 0.0  ;;  %v1067_v58 = vmax.f32 %v1063_v56, 0.0  ;;  %v1068_v46 = vmax.f32 %v1064_v37, 0.0 }
 0x2ce   :  { %1069 = vst [vmem:[#allocation10] sm:$0xff] %v1065_v34 }
 0x2cf   :  { %1070 = vst [vmem:[#allocation10 + $0x8] sm:$0xff] %v1066_v36 }
 0x2d0   :  { %1071 = vst [vmem:[#allocation10 + $0x10] sm:$0xff] %v1067_v58 }
 0x2d1   :  { %1072 = vst [vmem:[#allocation10 + $0x18] sm:$0xff] %v1068_v46 }
 0x2d2   :  { %1085 = dma.vmem_to_hbm [thread:$0]  %s1078_s6, 512, %s1080_s15, [#allocation4], %s1336_s17, %s1336_s17, %s1337_s18  }
 0x2d3   :  { %1333 = dma.done.wait [#allocation4], 512  }
 0x2d4   :  { %1334 = vsyncadd [#allocation4], 4294966784 }
 0x2d5   :  { %1090 = vsyncpa [#allocation3], 1 }
 0x2d6   :  { %1091 = vsyncpa [#allocation6], 1 }
 0x2d7   :  { %1092 = vsyncpa [#allocation9], 1 }
 0x2d8   :  { %1093 = vsyncpa [#allocation4], 1 }

</bundles_post_ra>
